<compile_context>
chip_gen: v6e
topology: v6e:2x2x1
jax: 0.10.0
libtpu: 0.0.40
codegen_flags: <defaults>
</compile_context>

<pallas_src>
import numpy as np

import jax
import jax.numpy as jnp
from jax.experimental import pallas as pl
from jax.experimental.pallas import tpu as pltpu


def _policy_probs_kernel(x_ref, w_ref, s_ref, o_ref):
    # x_ref: (TB, G*A*N)  packed, lane-dense block of flattened distributions.
    # w_ref: (G*A*N, G*A) block-diagonal expected-value weights, 1/T folded in.
    # s_ref: (G*A, G*A)   segmented-sum matrix kron(I_G, ones(A,A)).
    # o_ref: (TB, G*A)    softmax probabilities (G independent groups per row).
    logits = jnp.dot(
        x_ref[...].astype(jnp.float32),          # f32 even for bf16 inputs
        w_ref[...],                               # already f32
        preferred_element_type=jnp.float32,
    )                                             # == exp_values / T, (TB, G*A)

    # Per packed-row max: identical shift for every group in the row, so the
    # softmax result is unchanged (shift invariance).  EV lies in [0,1], so
    # exponents stay tiny for any reasonable temperature.
    m = jnp.max(logits, axis=-1, keepdims=True)
    e = jnp.exp(logits - m)

    # Per-group sum + broadcast back to every lane of the group, on the MXU.
    denom = jnp.dot(e, s_ref[...], preferred_element_type=jnp.float32)

    probs = e * pl.reciprocal(denom, approx=False)   # exact; swap approx=True if ~1e-6 ok
    o_ref[...] = probs.astype(o_ref.dtype)


def _expected_value_weights_np(n: int, T: float) -> np.ndarray:
    # w[i] = (i + 0.5)/(n - 1) for i < n-1, w[n-1] = 1, with 1/T folded in (f32).
    w = np.zeros((n,), dtype=np.float32)
    if n > 1:
        w[: n - 1] = (np.arange(n - 1, dtype=np.float32) + 0.5) / np.float32(n - 1)
    w[n - 1] = 1.0
    return w / np.float32(T)


def _pick_group_size(batch: int, a: int, n: int, w_budget_bytes: int = 8 << 20) -> int:
    """Largest divisor of `batch` with G*A <= 128 and a bounded weight matrix."""
    cap = max(1, 128 // max(a, 1))
    for g in range(min(cap, batch), 0, -1):
        if batch % g == 0 and (g * a * n) * (g * a) * 4 <= w_budget_bytes:
            return g
    return 1


def softmax_policy_probs_from_distributions(ps, T, *, max_block_bytes=4 << 20):
    """ps: (..., A, N) distributions over [0,1]; T: static (Python) temperature.

    Returns (..., A) = softmax(sum_bins(ps * w) / T, axis=-1).
    """
    *lead, A, N = ps.shape
    B = 1
    for d in lead:
        B *= d
    if B == 0:
        return jnp.zeros((*lead, A), dtype=ps.dtype)

    # ---- lane-dense packing: G original rows per kernel row (free reshape) ----
    # TODO(synk): for very large A*N*A the resident weight matrix would need
    # K-tiling of the expected-value matmul; typical bin/action counts are small.
    G = _pick_group_size(B, A, N)
    B2 = B // G
    GA = G * A
    K = GA * N

    x2 = ps.reshape(B2, K)

    # Trace-time constants (numpy): block-diagonal EV weights and segmented-sum.
    w = _expected_value_weights_np(N, float(T))
    W2 = np.kron(np.eye(GA, dtype=np.float32), w[:, None])                  # (K, GA)
    Ssum = np.kron(np.eye(G, dtype=np.float32), np.ones((A, A), np.float32))  # (GA, GA)

    # Batch tile: ~max_block_bytes per input block, multiple of 8 sublanes
    # (or the whole batch if it is small) so the (8,128) block rules hold.
    row_bytes = max(K * 4, 1)
    tb_cap = max(8, ((max_block_bytes // row_bytes) // 8) * 8)
    tb2 = B2 if B2 <= tb_cap else tb_cap
    grid = (pl.cdiv(B2, tb2),)

    out = pl.pallas_call(
        _policy_probs_kernel,
        out_shape=jax.ShapeDtypeStruct((B2, GA), ps.dtype),
        grid_spec=pltpu.PrefetchScalarGridSpec(
            num_scalar_prefetch=0,
            grid=grid,
            in_specs=[
                pl.BlockSpec((tb2, K), lambda i: (i, 0)),    # packed batch tiles
                pl.BlockSpec((K, GA), lambda i: (0, 0)),     # EV weights, resident
                pl.BlockSpec((GA, GA), lambda i: (0, 0)),    # segmented sum, resident
            ],
            out_specs=pl.BlockSpec((tb2, GA), lambda i: (i, 0)),
        ),
        compiler_params=pltpu.CompilerParams(
            dimension_semantics=("parallel",),    # shard batch tiles across TCs
            vmem_limit_bytes=32 * 1024 * 1024,
        ),
    )(x2, jnp.asarray(W2), jnp.asarray(Ssum))

    return out.reshape(*lead, A)


def _reference(ps, T):
    n = ps.shape[-1]
    i = jnp.arange(n, dtype=jnp.float32)
    w = jnp.where(i == n - 1, jnp.float32(1.0), (i + 0.5) / jnp.float32(n - 1))
    ev = jnp.sum(ps.astype(jnp.float32) * w, axis=-1)
    return jax.nn.softmax(ev / T, axis=-1).astype(ps.dtype)


if __name__ == "__main__":
    key = jax.random.PRNGKey(0)
    # batch x extra x actions x bins  (softmax over the action axis)
    B0, B1, A, N = 2, 3, 8, 16
    T = 0.7

    raw = jax.random.uniform(key, (B0, B1, A, N), dtype=jnp.float32)
    ps = raw / jnp.sum(raw, axis=-1, keepdims=True)   # valid distributions

    out = softmax_policy_probs_from_distributions(ps, T)
    out = jax.block_until_ready(out)

    ref = _reference(ps, T)
    assert out.shape == (B0, B1, A), out.shape
    assert jnp.allclose(out, ref, atol=1e-5, rtol=1e-5), (out, ref)
    assert jnp.allclose(jnp.sum(out, axis=-1), 1.0, atol=1e-5)

    print("KERNEL_OK")
</pallas_src>

<mosaic_0001>
module attributes {stable_mosaic.version = 11 : i64} {
  func.func @_policy_probs_kernel(%arg0: i32, %arg1: memref<1x768xf32, #tpu.memory_space<vmem>>, %arg2: memref<768x48xf32, #tpu.memory_space<vmem>>, %arg3: memref<48x48xf32, #tpu.memory_space<vmem>>, %arg4: memref<1x48xf32, #tpu.memory_space<vmem>>) attributes {dimension_semantics = [#tpu.dimension_semantics<parallel>], iteration_bounds = array<i64: 1>, scalar_prefetch = 0 : i64, scratch_operands = 0 : i64, tpu.core_type = #tpu.core_type<tc>, window_params = [{transform_indices = @transform_0, window_bounds = array<i64: 1, 768>}, {pipeline_mode = #tpu.pipeline_mode<synchronous>, transform_indices = @transform_1, window_bounds = array<i64: 768, 48>}, {pipeline_mode = #tpu.pipeline_mode<synchronous>, transform_indices = @transform_2, window_bounds = array<i64: 48, 48>}, {transform_indices = @transform_3, window_bounds = array<i64: 1, 48>}]} {
    %c0 = arith.constant 0 : index
    %c0_0 = arith.constant 0 : index
    %0 = vector.load %arg1[%c0, %c0_0] : memref<1x768xf32, #tpu.memory_space<vmem>>, vector<1x768xf32>
    %c0_1 = arith.constant 0 : index
    %c0_2 = arith.constant 0 : index
    %1 = vector.load %arg2[%c0_1, %c0_2] : memref<768x48xf32, #tpu.memory_space<vmem>>, vector<768x48xf32>
    %cst = arith.constant dense<0.000000e+00> : vector<1x48xf32>
    %2 = tpu.matmul %0, %1, %cst {dimension_numbers = #tpu.dot_dimension_numbers<[1], [0], [0], [1], [0, 0, 1, 1], [], []>} : vector<1x768xf32>, vector<768x48xf32>, vector<1x48xf32> -> vector<1x48xf32>
    %cst_3 = arith.constant dense<0xFF800000> : vector<1xf32>
    %3 = vector.multi_reduction <maximumf>, %2, %cst_3 [1] : vector<1x48xf32> to vector<1xf32>
    %4 = vector.shape_cast %3 : vector<1xf32> to vector<1x1xf32>
    %5 = vector.broadcast %4 : vector<1x1xf32> to vector<1x48xf32>
    %6 = arith.subf %2, %5 : vector<1x48xf32>
    %7 = math.exp %6 : vector<1x48xf32>
    %c0_4 = arith.constant 0 : index
    %c0_5 = arith.constant 0 : index
    %8 = vector.load %arg3[%c0_4, %c0_5] : memref<48x48xf32, #tpu.memory_space<vmem>>, vector<48x48xf32>
    %cst_6 = arith.constant dense<0.000000e+00> : vector<1x48xf32>
    %9 = tpu.matmul %7, %8, %cst_6 {dimension_numbers = #tpu.dot_dimension_numbers<[1], [0], [0], [1], [0, 0, 1, 1], [], []>} : vector<1x48xf32>, vector<48x48xf32>, vector<1x48xf32> -> vector<1x48xf32>
    %10 = tpu.reciprocal %9 : vector<1x48xf32> -> vector<1x48xf32>
    %11 = arith.mulf %7, %10 : vector<1x48xf32>
    %c0_7 = arith.constant 0 : index
    %c0_8 = arith.constant 0 : index
    %12 = vector.load %arg4[%c0_7, %c0_8] : memref<1x48xf32, #tpu.memory_space<vmem>>, vector<1x48xf32>
    tpu.vector_store %arg4[%c0_7, %c0_8], %11 {strides = array<i32>} : memref<1x48xf32, #tpu.memory_space<vmem>>, vector<1x48xf32>,
    return
  }
  func.func @transform_0(%arg0: i32) -> (i32, i32) {
    %c0_i32 = arith.constant 0 : i32
    %c0_i32_0 = arith.constant 0 : i32
    return %arg0, %c0_i32 : i32, i32
  }
  func.func @transform_1(%arg0: i32) -> (i32, i32) {
    %c0_i32 = arith.constant 0 : i32
    %c0_i32_0 = arith.constant 0 : i32
    %c0_i32_1 = arith.constant 0 : i32
    return %c0_i32, %c0_i32_0 : i32, i32
  }
  func.func @transform_2(%arg0: i32) -> (i32, i32) {
    %c0_i32 = arith.constant 0 : i32
    %c0_i32_0 = arith.constant 0 : i32
    %c0_i32_1 = arith.constant 0 : i32
    return %c0_i32, %c0_i32_0 : i32, i32
  }
  func.func @transform_3(%arg0: i32) -> (i32, i32) {
    %c0_i32 = arith.constant 0 : i32
    %c0_i32_0 = arith.constant 0 : i32
    return %arg0, %c0_i32 : i32, i32
  }
}

</mosaic_0001>

<bundles_post_ra>
// kernel: tpu_custom_call.1
= control target key start
LH: loop header
LB: loop body
LE: loop exit
PB: predicated region body
PF: predicated region fallthrough
CT: control target
= control target key end

     0   :  { %v113_v38 = vlaneseq  ;;  %s967_s0 = inlined_call_operand.vmem [shape: f32[1,768], index: 0, kind: input, shape index: {}]   ;;  %s968_s1 = inlined_call_operand.vmem [shape: f32[768,48], index: 1, kind: input, shape index: {}]   ;;  %s969_s2 = inlined_call_operand.vmem [shape: f32[48,48], index: 2, kind: input, shape index: {}]   ;;  %s970_s3 = inlined_call_operand.hbm [shape: f32[1,48], index: 3, kind: output, shape index: {}]  }
   0x1   :  { %v47_v0 = vld [vmem:[%s968_s1 + $0xf8] sm:$0xff]  ;;  %v46_v4 = vld [vmem:[%s968_s1 + $0xf0] sm:$0xff]  ;;  %v45_v8 = vld [vmem:[%s968_s1 + $0xe8] sm:$0xff] }
   0x2   :  { %v79_v1 = vld [vmem:[%s968_s1 + $0x1f8] sm:$0xff]  ;;  %458 = vmatprep.subr.mxu0 %v47_v0  ;;  %v78_v5 = vld [vmem:[%s968_s1 + $0x1f0] sm:$0xff]  ;;  %v77_v9 = vld [vmem:[%s968_s1 + $0x1e8] sm:$0xff]  ;;  %v775_v47 = vshrl.u32 %v113_v38, 7 }
   0x3   :  { %v31_v2 = vld [vmem:[%s968_s1 + $0x78] sm:$0xff]  ;;  %493 = vmatprep.subr.mxu1 %v79_v1  ;;  %v30_v6 = vld [vmem:[%s968_s1 + $0x70] sm:$0xff]  ;;  %v29_v10 = vld [vmem:[%s968_s1 + $0x68] sm:$0xff] }
   0x4   :  { %v63_v3 = vld [vmem:[%s968_s1 + $0x178] sm:$0xff]  ;;  %459 = vmatpush3.msra.mxu0 %v31_v2  ;;  %v62_v7 = vld [vmem:[%s968_s1 + $0x170] sm:$0xff]  ;;  %v61_v11 = vld [vmem:[%s968_s1 + $0x168] sm:$0xff]  ;;  %v119_v56 = vsub.s32 1, %v775_v47  ;;  %v127_v60 = vsub.s32 3, %v775_v47  ;;  %v115_v63 = vsub.s32 0, %v775_v47 }
   0x5   :  { %494 = vmatpush3.msra.mxu1 %v63_v3  ;;  %460 = vmatprep.subr.mxu0 %v46_v4  ;;  %v44_v12 = vld [vmem:[%s968_s1 + $0xe0] sm:$0xff]  ;;  %v43_v16 = vld [vmem:[%s968_s1 + $0xd8] sm:$0xff]  ;;  %v42_v20 = vld [vmem:[%s968_s1 + $0xd0] sm:$0xff]  ;;  %v123_v0 = vsub.s32 2, %v775_v47  ;;  %v135_v3 = vsub.s32 5, %v775_v47 }
   0x6   :  { %495 = vmatprep.subr.mxu1 %v78_v5  ;;  %461 = vmatpush3.msra.mxu0 %v30_v6  ;;  %v76_v13 = vld [vmem:[%s968_s1 + $0x1e0] sm:$0xff]  ;;  %v75_v17 = vld [vmem:[%s968_s1 + $0x1d8] sm:$0xff]  ;;  %v74_v21 = vld [vmem:[%s968_s1 + $0x1d0] sm:$0xff] }
   0x7   :  { %496 = vmatpush3.msra.mxu1 %v62_v7  ;;  %462 = vmatprep.subr.mxu0 %v45_v8  ;;  %v28_v14 = vld [vmem:[%s968_s1 + $0x60] sm:$0xff]  ;;  %v27_v18 = vld [vmem:[%s968_s1 + $0x58] sm:$0xff]  ;;  %v26_v22 = vld [vmem:[%s968_s1 + $0x50] sm:$0xff] }
   0x8   :  { %497 = vmatprep.subr.mxu1 %v77_v9  ;;  %v60_v15 = vld [vmem:[%s968_s1 + $0x160] sm:$0xff]  ;;  %463 = vmatpush3.msra.mxu0 %v29_v10  ;;  %v59_v19 = vld [vmem:[%s968_s1 + $0x158] sm:$0xff]  ;;  %v58_v23 = vld [vmem:[%s968_s1 + $0x150] sm:$0xff] }
   0x9   :  { %498 = vmatpush3.msra.mxu1 %v61_v11  ;;  %464 = vmatprep.subr.mxu0 %v44_v12  ;;  %v41_v24 = vld [vmem:[%s968_s1 + $0xc8] sm:$0xff]  ;;  %v40_v28 = vld [vmem:[%s968_s1 + $0xc0] sm:$0xff]  ;;  %v39_v32 = vld [vmem:[%s968_s1 + $0xb8] sm:$0xff] }
   0xa   :  { %499 = vmatprep.subr.mxu1 %v76_v13  ;;  %465 = vmatpush3.msra.mxu0 %v28_v14  ;;  %v73_v25 = vld [vmem:[%s968_s1 + $0x1c8] sm:$0xff]  ;;  %v72_v29 = vld [vmem:[%s968_s1 + $0x1c0] sm:$0xff]  ;;  %v71_v33 = vld [vmem:[%s968_s1 + $0x1b8] sm:$0xff] }
   0xb   :  { %500 = vmatpush3.msra.mxu1 %v60_v15  ;;  %466 = vmatprep.subr.mxu0 %v43_v16  ;;  %v25_v26 = vld [vmem:[%s968_s1 + $0x48] sm:$0xff]  ;;  %v24_v30 = vld [vmem:[%s968_s1 + $0x40] sm:$0xff]  ;;  %v23_v34 = vld [vmem:[%s968_s1 + $0x38] sm:$0xff] }
   0xc   :  { %501 = vmatprep.subr.mxu1 %v75_v17  ;;  %467 = vmatpush3.msra.mxu0 %v27_v18  ;;  %v57_v27 = vld [vmem:[%s968_s1 + $0x148] sm:$0xff]  ;;  %v56_v31 = vld [vmem:[%s968_s1 + $0x140] sm:$0xff]  ;;  %v55_v35 = vld [vmem:[%s968_s1 + $0x138] sm:$0xff] }
   0xd   :  { %502 = vmatpush3.msra.mxu1 %v59_v19  ;;  %468 = vmatprep.subr.mxu0 %v42_v20  ;;  %v38_v36 = vld [vmem:[%s968_s1 + $0xb0] sm:$0xff]  ;;  %v37_v41 = vld [vmem:[%s968_s1 + $0xa8] sm:$0xff]  ;;  %v36_v45 = vld [vmem:[%s968_s1 + $0xa0] sm:$0xff] }
   0xe   :  { %503 = vmatprep.subr.mxu1 %v74_v21  ;;  %469 = vmatpush3.msra.mxu0 %v26_v22  ;;  %v70_v37 = vld [vmem:[%s968_s1 + $0x1b0] sm:$0xff]  ;;  %v69_v42 = vld [vmem:[%s968_s1 + $0x1a8] sm:$0xff]  ;;  %v68_v46 = vld [vmem:[%s968_s1 + $0x1a0] sm:$0xff] }
   0xf   :  { %504 = vmatpush3.msra.mxu1 %v58_v23  ;;  %470 = vmatprep.subr.mxu0 %v41_v24  ;;  %v22_v39 = vld [vmem:[%s968_s1 + $0x30] sm:$0xff]  ;;  %v21_v43 = vld [vmem:[%s968_s1 + $0x28] sm:$0xff]  ;;  %v20_v48 = vld [vmem:[%s968_s1 + $0x20] sm:$0xff] }
  0x10   :  { %505 = vmatprep.subr.mxu1 %v73_v25  ;;  %471 = vmatpush3.msra.mxu0 %v25_v26  ;;  %v54_v40 = vld [vmem:[%s968_s1 + $0x130] sm:$0xff]  ;;  %v53_v44 = vld [vmem:[%s968_s1 + $0x128] sm:$0xff]  ;;  %v52_v49 = vld [vmem:[%s968_s1 + $0x120] sm:$0xff] }
  0x11   :  { %506 = vmatpush3.msra.mxu1 %v57_v27  ;;  %472 = vmatprep.subr.mxu0 %v40_v28  ;;  %v35_v50 = vld [vmem:[%s968_s1 + $0x98] sm:$0xff]  ;;  %v34_v54 = vld [vmem:[%s968_s1 + $0x90] sm:$0xff]  ;;  %v811_v59 = vld [vmem:[%s967_s0] sm:$0x3f] }
  0x12   :  { %507 = vmatprep.subr.mxu1 %v72_v29  ;;  %473 = vmatpush3.msra.mxu0 %v24_v30  ;;  %v67_v51 = vld [vmem:[%s968_s1 + $0x198] sm:$0xff]  ;;  %v66_v55 = vld [vmem:[%s968_s1 + $0x190] sm:$0xff]  ;;  %v33_v61 = vld [vmem:[%s968_s1 + $0x88] sm:$0xff]  ;;  %v120_v6 = vrot.slane %v811_v59, %v119_v56  ;;  %v128_v8 = vrot.slane %v811_v59, %v127_v60  ;;  %v116_v10 = vrot.slane %v811_v59, %v115_v63 }
  0x13   :  { %508 = vmatpush3.msra.mxu1 %v56_v31  ;;  %474 = vmatprep.subr.mxu0 %v39_v32  ;;  %v19_v52 = vld [vmem:[%s968_s1 + $0x18] sm:$0xff]  ;;  %v18_v57 = vld [vmem:[%s968_s1 + $0x10] sm:$0xff]  ;;  %v65_v62 = vld [vmem:[%s968_s1 + $0x188] sm:$0xff]  ;;  %v124_v11 = vrot.slane %v811_v59, %v123_v0  ;;  %v136_v12 = vrot.slane %v811_v59, %v135_v3 }
  0x14   :  { %509 = vmatprep.subr.mxu1 %v71_v33  ;;  %475 = vmatpush3.msra.mxu0 %v23_v34  ;;  %v51_v53 = vld [vmem:[%s968_s1 + $0x118] sm:$0xff]  ;;  %v50_v58 = vld [vmem:[%s968_s1 + $0x110] sm:$0xff]  ;;  %v17_v1 = vld [vmem:[%s968_s1 + $0x8] sm:$0xff] }
  0x15   :  { %510 = vmatpush3.msra.mxu1 %v55_v35  ;;  %476 = vmatprep.subr.mxu0 %v38_v36  ;;  %v49_v2 = vld [vmem:[%s968_s1 + $0x108] sm:$0xff]  ;;  %v32_v4 = vld [vmem:[%s968_s1 + $0x80] sm:$0xff]  ;;  %v111_v13 = vld [vmem:[%s968_s1 + $0x2f8] sm:$0xff] }
  0x16   :  { %511 = vmatprep.subr.mxu1 %v70_v37  ;;  %477 = vmatpush3.msra.mxu0 %v22_v39  ;;  %v64_v5 = vld [vmem:[%s968_s1 + $0x180] sm:$0xff] }
  0x17   :  { %512 = vmatpush3.msra.mxu1 %v54_v40  ;;  %478 = vmatprep.subr.mxu0 %v37_v41  ;;  %v16_v7 = vld [vmem:[%s968_s1] sm:$0xff] }
  0x18   :  { %513 = vmatprep.subr.mxu1 %v69_v42  ;;  %479 = vmatpush3.msra.mxu0 %v21_v43  ;;  %v48_v9 = vld [vmem:[%s968_s1 + $0x100] sm:$0xff] }
  0x19   :  { %514 = vmatpush3.msra.mxu1 %v53_v44  ;;  %480 = vmatprep.subr.mxu0 %v36_v45 }
  0x1a   :  { %515 = vmatprep.subr.mxu1 %v68_v46  ;;  %481 = vmatpush3.msra.mxu0 %v20_v48 }
  0x1b   :  { %516 = vmatpush3.msra.mxu1 %v52_v49  ;;  %482 = vmatprep.subr.mxu0 %v35_v50 }
  0x1c   :  { %517 = vmatprep.subr.mxu1 %v67_v51  ;;  %483 = vmatpush3.msra.mxu0 %v19_v52 }
  0x1d   :  { %518 = vmatpush3.msra.mxu1 %v51_v53  ;;  %484 = vmatprep.subr.mxu0 %v34_v54 }
  0x1e   :  { %519 = vmatprep.subr.mxu1 %v66_v55  ;;  %485 = vmatpush3.msra.mxu0 %v18_v57 }
  0x1f   :  { %520 = vmatpush3.msra.mxu1 %v50_v58  ;;  %486 = vmatprep.subr.mxu0 %v33_v61 }
  0x20   :  { %521 = vmatprep.subr.mxu1 %v65_v62  ;;  %487 = vmatpush3.msra.mxu0 %v17_v1 }
  0x21   :  { %522 = vmatpush3.msra.mxu1 %v49_v2  ;;  %488 = vmatprep.subr.mxu0 %v32_v4 }
  0x22   :  { %523 = vmatprep.subr.mxu1 %v64_v5  ;;  %489 = vmatpush3.msra.mxu0 %v16_v7 }
  0x23   :  { %207 = vmatprep.mubr.f32.mxu0 %v120_v6 }
  0x24   :  { %8 = vsyncpa [#allocation3], 0  ;;  %524 = vmatpush3.msra.mxu1 %v48_v9  ;;  %277 = vmatprep.mubr.f32.mxu1 %v128_v8  ;;  %v95_v14 = vld [vmem:[%s968_s1 + $0x278] sm:$0xff]  ;;  %v110_v15 = vld [vmem:[%s968_s1 + $0x2f0] sm:$0xff]  ;;  %v131_v41 = vsub.s32 4, %v775_v47  ;;  %vm353_vm0 = vcmask 385024  }
  0x25   :  { %208 = vmatmul.mubr.f32.vlgmr.msra.gmra.mxu0 %v116_v10  ;;  %278 = vmatmul.mubr.f32.vlgmr.msra.gmra.mxu1 %v124_v11  ;;  %v94_v16 = vld [vmem:[%s968_s1 + $0x270] sm:$0xff]  ;;  %v109_v17 = vld [vmem:[%s968_s1 + $0x2e8] sm:$0xff]  ;;  %v108_v19 = vld [vmem:[%s968_s1 + $0x2e0] sm:$0xff]  ;;  %v614_v60 = vmov 0.0   ;;  %vm615_vm1 = vmmov 0   ;;  %vm366_vm2 = vcmask 392192  }
  0x26   :  { %528 = vmatprep.subr.mxu0 %v111_v13  ;;  %347 = vmatprep.mubr.f32.mxu0 %v136_v12  ;;  %v93_v18 = vld [vmem:[%s968_s1 + $0x268] sm:$0xff]  ;;  %v92_v20 = vld [vmem:[%s968_s1 + $0x260] sm:$0xff]  ;;  %v107_v21 = vld [vmem:[%s968_s1 + $0x2d8] sm:$0xff]  ;;  %v132_v46 = vrot.slane %v811_v59, %v131_v41  ;;  %s616_s24 = smov [#allocation2]  }
  0x27   :  { %529 = vmatpush3.msra.mxu0 %v95_v14  ;;  %v91_v22 = vld [vmem:[%s968_s1 + $0x258] sm:$0xff]  ;;  %v106_v23 = vld [vmem:[%s968_s1 + $0x2d0] sm:$0xff]  ;;  %v105_v25 = vld [vmem:[%s968_s1 + $0x2c8] sm:$0xff]  ;;  %570 = vmatprep.subr.mxu1 %v614_v60  ;;  %s449_s25 = sshll.u32 %s616_s24, 4  ;;  %s450_s25 = int_to_ptr.vmem [resolvable:$true] %s449_s25 }
  0x28   :  { %530 = vmatprep.subr.mxu0 %v110_v15  ;;  %v90_v24 = vld [vmem:[%s968_s1 + $0x250] sm:$0xff]  ;;  %v89_v26 = vld [vmem:[%s968_s1 + $0x248] sm:$0xff]  ;;  %v104_v27 = vld [vmem:[%s968_s1 + $0x2c0] sm:$0xff]  ;;  %582 = vmatprep.mubr.msk.f32.mxu1 %vm615_vm1, %v614_v60  ;;  %s596_s26 = scalar_lea.vmem %s450_s25, 32  ;;  %p597_p1 = scmp.lt.s32.totalorder %s450_s25, %s450_s25 }
  0x29   :  { %531 = vmatpush3.msra.mxu0 %v94_v16  ;;  %v88_v28 = vld [vmem:[%s968_s1 + $0x240] sm:$0xff]  ;;  %v103_v29 = vld [vmem:[%s968_s1 + $0x2b8] sm:$0xff]  ;;  %v102_v31 = vld [vmem:[%s968_s1 + $0x2b0] sm:$0xff] }
  0x2a   :  { %532 = vmatprep.subr.mxu0 %v109_v17  ;;  %v87_v30 = vld [vmem:[%s968_s1 + $0x238] sm:$0xff]  ;;  %v86_v32 = vld [vmem:[%s968_s1 + $0x230] sm:$0xff]  ;;  %v101_v33 = vld [vmem:[%s968_s1 + $0x2a8] sm:$0xff] }
  0x2b   :  { %533 = vmatpush3.msra.mxu0 %v93_v18  ;;  %v85_v34 = vld [vmem:[%s968_s1 + $0x228] sm:$0xff]  ;;  %v100_v35 = vld [vmem:[%s968_s1 + $0x2a0] sm:$0xff]  ;;  %v99_v37 = vld [vmem:[%s968_s1 + $0x298] sm:$0xff] }
  0x2c   :  { %534 = vmatprep.subr.mxu0 %v108_v19  ;;  %v84_v36 = vld [vmem:[%s968_s1 + $0x220] sm:$0xff]  ;;  %v83_v38 = vld [vmem:[%s968_s1 + $0x218] sm:$0xff]  ;;  %v98_v39 = vld [vmem:[%s968_s1 + $0x290] sm:$0xff] }
  0x2d   :  { %535 = vmatpush3.msra.mxu0 %v92_v20  ;;  %v82_v40 = vld [vmem:[%s968_s1 + $0x210] sm:$0xff]  ;;  %v97_v42 = vld [vmem:[%s968_s1 + $0x288] sm:$0xff]  ;;  %v96_v44 = vld [vmem:[%s968_s1 + $0x280] sm:$0xff] }
  0x2e   :  { %536 = vmatprep.subr.mxu0 %v107_v21  ;;  %v81_v43 = vld [vmem:[%s968_s1 + $0x208] sm:$0xff]  ;;  %v80_v45 = vld [vmem:[%s968_s1 + $0x200] sm:$0xff]  ;;  %v363_v62 = vld [vmem:[%s969_s2 + $0x18] sm:$0xff] }
  0x2f   :  { %537 = vmatpush3.msra.mxu0 %v91_v22  ;;  %v365_v59 = vld [vmem:[%s969_s2 + $0x28] sm:$0xff]  ;;  %v364_v61 = vld [vmem:[%s969_s2 + $0x20] sm:$0xff]  ;;  %v362_v63 = vld [vmem:[%s969_s2 + $0x10] sm:$0xff] }
  0x30   :  { %538 = vmatprep.subr.mxu0 %v106_v23  ;;  %571 = vmatpush3.msra.mxu1 %v365_v59  ;;  %v361_v0 = vld [vmem:[%s969_s2 + $0x8] sm:$0xff]  ;;  %v360_v1 = vld [vmem:[%s969_s2] sm:$0xff]  ;;  %s592_s2 = scalar_lea.vmem %s450_s25, 16 }
  0x31   :  { %539 = vmatpush3.msra.mxu0 %v90_v24  ;;  %572 = vmatprep.subr.mxu1 %v614_v60  ;;  %p593_p0 = scmp.ne.s32.totalorder %s450_s25, %s592_s2  ;;  %p598_p2 = scmp.lt.s32.totalorder %s596_s26, %s592_s2 }
  0x32   :  { %540 = vmatprep.subr.mxu0 %v105_v25  ;;  %573 = vmatpush3.msra.mxu1 %v364_v61 }
  0x33   :  { %541 = vmatpush3.msra.mxu0 %v89_v26  ;;  %574 = vmatprep.subr.mxu1 %v614_v60  ;;  %p599_p3 = por %p598_p2, %p597_p1 }
  0x34   :  { %542 = vmatprep.subr.mxu0 %v104_v27  ;;  %575 = vmatpush3.msra.mxu1 %v363_v62 }
  0x35   :  { %543 = vmatpush3.msra.mxu0 %v88_v28  ;;  %576 = vmatprep.subr.mxu1 %v614_v60  ;;  %p600_p4 = pnand %p599_p3, %p593_p0 }
  0x36   :  { %544 = vmatprep.subr.mxu0 %v103_v29  ;;  %577 = vmatpush3.msra.mxu1 %v362_v63 }
  0x37   :  { %545 = vmatpush3.msra.mxu0 %v87_v30  ;;  %578 = vmatprep.subr.mxu1 %v614_v60 }
  0x38   :  { %546 = vmatprep.subr.mxu0 %v102_v31  ;;  %579 = vmatpush3.msra.mxu1 %v361_v0 }
  0x39   :  { %547 = vmatpush3.msra.mxu0 %v86_v32  ;;  %580 = vmatprep.subr.mxu1 %v614_v60 }
  0x3a   :  { %548 = vmatprep.subr.mxu0 %v101_v33  ;;  %581 = vmatpush3.msra.mxu1 %v360_v1 }
  0x3b   :  { %549 = vmatpush3.msra.mxu0 %v85_v34 }
  0x3c   :  { %550 = vmatprep.subr.mxu0 %v100_v35 }
  0x3d   :  { %551 = vmatpush3.msra.mxu0 %v84_v36 }
  0x3e   :  { %552 = vmatprep.subr.mxu0 %v99_v37 }
  0x3f   :  { %553 = vmatpush3.msra.mxu0 %v83_v38 }
  0x40   :  { %554 = vmatprep.subr.mxu0 %v98_v39 }
  0x41   :  { %555 = vmatpush3.msra.mxu0 %v82_v40 }
  0x42   :  { %556 = vmatprep.subr.mxu0 %v97_v42 }
  0x43   :  { %557 = vmatpush3.msra.mxu0 %v81_v43 }
  0x44   :  { %558 = vmatprep.subr.mxu0 %v96_v44 }
  0x45   :  { %559 = vmatpush3.msra.mxu0 %v80_v45 }
  0x46   :  { %348 = vmatmul.mubr.f32.vlgmr.msra.gmra.mxu0 %v132_v46 }
  0xe5   :  { %v490_v47 = vpop.f32.mrf.mxu0  ;;  %v525_v48 = vpop.f32.mrf.mxu1 }
  0xe7   :  { %v491_v49 = vpop.f32.mrf.mxu0  ;;  %v526_v50 = vpop.f32.mrf.mxu1 }
  0xe8   :  { %v492_v51 = vadd.f32 %v491_v49, %v490_v47  ;;  %v527_v52 = vadd.f32 %v526_v50, %v525_v48 }
  0xea   :  { %v280_v55 = vadd.f32 %v527_v52, %v492_v51 }
 0x106   :  { %v560_v53 = vpop.f32.mrf.mxu0 }
 0x108   :  { %v561_v54 = vpop.f32.mrf.mxu0 }
 0x109   :  { %v562_v56 = vadd.f32 %v561_v54, %v560_v53 }
 0x10b   :  { %v350_v57 = vadd.f32 %v562_v56, %v280_v55 }
 0x10d   :  { %v354_v58 = vsel %vm353_vm0, %v350_v57, -inf }
 0x10e   :  { %355 = vmax.xlane.f32.xlu0 %v354_v58 }
 0x197   :  { %v356_v2 = vpop.xlane.xlu0 %355 }
 0x198   :  { %v357_v3 = vsub.f32 %v350_v57, %v356_v2 }
 0x19a   :  { %v358_v4 = vmul.f32 1.442695, %v357_v3 }
 0x19c   :  { %588 = vpow2.f32 %v358_v4 }
 0x1a9   :  { %v589_v5 = vpop.eup %588 }
 0x1aa   :  { %583 = vmatmul.mubr.msk.f32.vlgmr.msra.gmra.mxu1 %vm366_vm2, %v589_v5 }
 0x26a   :  { %v436_v6 = vpop.f32.mrf.mxu1 }
 0x26b   :  { %590 = vrcp.f32 %v436_v6 }
 0x26c   :  { %v584_v7 = vpop.f32.mrf.mxu1 }
 0x278   :  { %v591_v8 = vpop.eup %590 }
 0x279   :  { %v441_v9 = vmul.f32 %v591_v8, %v589_v5 }
 0x27b   :  { %442 = vst.msk [vmem:[#allocation2] sm:$0x1] %vm353_vm0, %v441_v9 }
 0x27c   :  { %603 = shalt.err (!%p600_p4)
}
 0x27d   :  { %452 = dma.vmem_to_hbm [thread:$0]  %s450_s25, 16, %s970_s3, [#allocation3]  }
 0x27e   :  { %612 = dma.done.wait [#allocation3], 16  }
 0x27f   :  { %613 = vsyncadd [#allocation3], 4294967280 }
 0x280   :  { %456 = vsyncpa [#allocation3], 1 }

</bundles_post_ra>
